<compile_context>
chip_gen: v7x
topology: tpu7x:2x2x1
jax: 0.10.0
libtpu: 0.0.40
codegen_flags: <defaults>
</compile_context>

<pallas_src>
import functools

import jax
import jax.numpy as jnp
from jax.experimental import pallas as pl
from jax.experimental.pallas import tpu as pltpu


# ----------------------------------------------------------------------------- kernels


def _layernorm_kernel(x_ref, a_ref, b_ref, o_ref, *, eps: float, feat: int):
    """Standard path: x_ref (T, F) block; a_ref / b_ref (1, F) resident parameter rows."""
    x = x_ref[...].astype(jnp.float32)
    a = a_ref[...].astype(jnp.float32)        # (1, F) broadcasts over rows
    b = b_ref[...].astype(jnp.float32)

    mean = jnp.sum(x, axis=-1, keepdims=True) * jnp.float32(1.0 / feat)     # (T, 1)
    d = x - mean
    # Centered, unbiased variance (Bessel's correction) -> matches torch.Tensor.std default
    # and avoids E[x^2]-E[x]^2 cancellation.
    var = jnp.sum(d * d, axis=-1, keepdims=True) * jnp.float32(1.0 / (feat - 1))
    std = jnp.sqrt(var)
    denom = std + jnp.float32(eps)

    # Per-row reciprocal on the EUP + one Newton-Raphson step -> f32-accurate, no divides.
    inv = pl.reciprocal(denom, approx=True)
    inv = inv * (jnp.float32(2.0) - denom * inv)

    o_ref[...] = (d * inv * a + b).astype(o_ref.dtype)


def _layernorm_packed_kernel(x_ref, a_ref, b_ref, seg_ref, segt_ref, o_ref,
                             *, eps: float, feat: int):
    """Lane-dense path for F < 128: k original rows packed per lane-row (k*F == 128).

    x_ref:   (T, k*F) block            a_ref/b_ref: (1, k*F) params tiled k times
    seg_ref: (k*F, k) one-hot segment-sum matrix    segt_ref: (k, k*F) broadcast matrix
    """
    x = x_ref[...].astype(jnp.float32)
    a = a_ref[...].astype(jnp.float32)
    b = b_ref[...].astype(jnp.float32)
    seg = seg_ref[...]                          # f32 (k*F, k)
    segt = segt_ref[...]                        # f32 (k, k*F)

    inv_f = jnp.float32(1.0 / feat)
    s = jnp.dot(x, seg, preferred_element_type=jnp.float32)              # (T, k) segment sums
    mean = s * inv_f                                                      # (T, k)
    mean_b = jnp.dot(mean, segt, preferred_element_type=jnp.float32)      # (T, k*F)
    d = x - mean_b
    sq = jnp.dot(d * d, seg, preferred_element_type=jnp.float32)          # (T, k) centered
    var = sq * jnp.float32(1.0 / (feat - 1))
    std = jnp.sqrt(var)
    denom = std + jnp.float32(eps)

    inv = pl.reciprocal(denom, approx=True)
    inv = inv * (jnp.float32(2.0) - denom * inv)                          # Newton step
    inv_b = jnp.dot(inv, segt, preferred_element_type=jnp.float32)        # (T, k*F)

    o_ref[...] = (d * inv_b * a + b).astype(o_ref.dtype)


# ----------------------------------------------------------------------------- tiling


def _choose_tile_rows(rows: int, feat: int, itemsize: int) -> int:
    # Sublane alignment: 8 for 4-byte dtypes, 16 for bf16/f16, 32 for 1-byte dtypes.
    sub = 8 if itemsize >= 4 else (16 if itemsize == 2 else 32)

    # Generation-aware working-set budget per grid step:
    #   2x double-buffered input + 2x double-buffered output (I/O dtype) + ~3 f32 temps.
    try:
        vmem_cap = pltpu.get_tpu_info().vmem_capacity_bytes
    except Exception:
        vmem_cap = 64 * 1024 * 1024                       # conservative (v7x-sized) fallback
    budget = (40 if vmem_cap >= 96 * 1024 * 1024 else 20) * 1024 * 1024
    bytes_per_row = feat * (4 * itemsize + 3 * 4)
    tile = budget // max(bytes_per_row, 1)

    # Target up to ~8 MiB of raw input per block: amortizes the ~0.35 us / ~600 cycle
    # per-grid-step overhead (>= 512 KiB-2 MiB blocks needed for ~85%+ of HBM roofline).
    tile = min(tile, max(sub, (8 * 1024 * 1024) // max(feat * itemsize, 1)))

    # Keep >= 4 grid steps when the problem allows it so the "parallel" axis can be
    # sharded across v7x's two TensorCores (harmless on single-TC v5e/v6e).
    if rows > 4 * sub:
        tile = min(tile, pl.cdiv(rows, 4))

    tile = max(sub, (tile // sub) * sub)
    if tile >= rows:
        return rows            # single block with dims equal to the array -> always legal
    return int(tile)


# ----------------------------------------------------------------------------- wrapper


def layer_norm(x, a_2, b_2, eps=1e-6, tile_rows=None):
    """x: (..., F); a_2, b_2: (F,). Returns same shape/dtype as x."""
    orig_shape = x.shape
    feat = orig_shape[-1]
    rows = 1
    for d in orig_shape[:-1]:
        rows *= d

    x2 = x.reshape(rows, feat)
    itemsize = x.dtype.itemsize

    # Lane-dense packing for narrow feature dims: (rows, F) -> (rows/k, k*F) with k*F = 128.
    k = (128 // feat) if (feat < 128 and 128 % feat == 0) else 1
    packed = (k > 1) and (rows % k == 0)

    if packed:
        work_rows, work_feat = rows // k, k * feat
        xw = x2.reshape(work_rows, work_feat)
        aw = jnp.tile(a_2.reshape(1, feat), (1, k))
        bw = jnp.tile(b_2.reshape(1, feat), (1, k))
        col_seg = jnp.arange(work_feat, dtype=jnp.int32) // feat
        seg = (col_seg[:, None] == jnp.arange(k, dtype=jnp.int32)[None, :]).astype(jnp.float32)
        seg_t = seg.T
    else:
        work_rows, work_feat = rows, feat
        xw = x2
        aw = a_2.reshape(1, feat)
        bw = b_2.reshape(1, feat)

    if tile_rows is None:
        tile_rows = _choose_tile_rows(work_rows, work_feat, itemsize)
    tile_rows = int(tile_rows)

    grid = (pl.cdiv(work_rows, tile_rows),)

    # VMEM limit derived from the actual tile (2x dbuf in + 2x dbuf out + ~3 f32 temps)
    # plus headroom for compiler-internal scratch; stays well inside v7x's 64 MiB.
    est_step_bytes = tile_rows * work_feat * (4 * itemsize + 3 * 4)
    vmem_limit = int(min(max(est_step_bytes + (8 << 20), 16 << 20), 48 << 20))

    cparams = pltpu.CompilerParams(
        dimension_semantics=("parallel",),
        vmem_limit_bytes=vmem_limit,
    )

    if packed:
        out = pl.pallas_call(
            functools.partial(_layernorm_packed_kernel, eps=float(eps), feat=feat),
            out_shape=jax.ShapeDtypeStruct((work_rows, work_feat), x.dtype),
            grid=grid,
            in_specs=[
                pl.BlockSpec((tile_rows, work_feat), lambda i: (i, 0)),
                pl.BlockSpec((1, work_feat), lambda i: (0, 0)),
                pl.BlockSpec((1, work_feat), lambda i: (0, 0)),
                pl.BlockSpec((work_feat, k), lambda i: (0, 0)),
                pl.BlockSpec((k, work_feat), lambda i: (0, 0)),
            ],
            out_specs=pl.BlockSpec((tile_rows, work_feat), lambda i: (i, 0)),
            compiler_params=cparams,
        )(xw, aw, bw, seg, seg_t)
    else:
        out = pl.pallas_call(
            functools.partial(_layernorm_kernel, eps=float(eps), feat=feat),
            out_shape=jax.ShapeDtypeStruct((work_rows, work_feat), x.dtype),
            grid=grid,
            in_specs=[
                pl.BlockSpec((tile_rows, work_feat), lambda i: (i, 0)),
                pl.BlockSpec((1, work_feat), lambda i: (0, 0)),
                pl.BlockSpec((1, work_feat), lambda i: (0, 0)),
            ],
            out_specs=pl.BlockSpec((tile_rows, work_feat), lambda i: (i, 0)),
            compiler_params=cparams,
        )(xw, aw, bw)

    return out.reshape(orig_shape)


def _layer_norm_ref(x, a_2, b_2, eps):
    # Pure-JAX reference with the same PyTorch semantics (unbiased std, eps on std).
    feat = x.shape[-1]
    mean = jnp.mean(x, axis=-1, keepdims=True)
    std = jnp.sqrt(jnp.sum((x - mean) ** 2, axis=-1, keepdims=True) / (feat - 1))
    return a_2 * (x - mean) / (std + eps) + b_2


# TODO(synk): Decoder.layers is an abstract, user-supplied DecoderLayer stack with no
# implementation in the spec; only the trailing LayerNorm is implemented as a kernel.
def decoder_forward(x, a_2, b_2, eps=1e-6):
    """Applies the Decoder's final LayerNorm to the (already layer-processed) activations."""
    return layer_norm(x, a_2, b_2, eps=eps)


if __name__ == "__main__":
    key = jax.random.PRNGKey(0)
    eps = 1e-6

    # 1) Small shape consistent with the module: (batch, seq, hidden) -> lane-dense packed path.
    batch, seq, features = 2, 8, 32
    x = jax.random.normal(key, (batch, seq, features), dtype=jnp.float32)
    a_2 = jnp.ones((features,), dtype=jnp.float32)      # nn.Parameter(torch.ones(features))
    b_2 = jnp.zeros((features,), dtype=jnp.float32)     # nn.Parameter(torch.zeros(features))

    out = decoder_forward(x, a_2, b_2, eps=eps)
    out = jax.block_until_ready(out)
    ref = _layer_norm_ref(x, a_2, b_2, eps)
    assert out.shape == x.shape and out.dtype == x.dtype
    assert jnp.allclose(out, ref, atol=1e-4, rtol=1e-4), "mismatch vs reference (packed small)"

    # 2) Lane-dense F=128, explicit tile, partial trailing block (rows=300, tile=64 -> grid 5).
    feat2 = 128
    x2 = jax.random.normal(jax.random.PRNGKey(1), (3, 100, feat2), dtype=jnp.float32)
    a2p = 1.0 + 0.1 * jax.random.normal(jax.random.PRNGKey(2), (feat2,), dtype=jnp.float32)
    b2p = 0.1 * jax.random.normal(jax.random.PRNGKey(3), (feat2,), dtype=jnp.float32)
    out2 = jax.block_until_ready(layer_norm(x2, a2p, b2p, eps=eps, tile_rows=64))
    ref2 = _layer_norm_ref(x2, a2p, b2p, eps)
    assert jnp.allclose(out2, ref2, atol=1e-4, rtol=1e-4), "mismatch vs reference (F=128 partial)"

    # 3) Packed path (F=32 -> k=4), multi-step grid with a partial trailing block.
    x3 = jax.random.normal(jax.random.PRNGKey(4), (4, 100, 32), dtype=jnp.float32)   # rows=400
    a3 = 1.0 + 0.1 * jax.random.normal(jax.random.PRNGKey(5), (32,), dtype=jnp.float32)
    b3 = 0.1 * jax.random.normal(jax.random.PRNGKey(6), (32,), dtype=jnp.float32)
    out3 = jax.block_until_ready(layer_norm(x3, a3, b3, eps=eps, tile_rows=24))       # grid 5
    ref3 = _layer_norm_ref(x3, a3, b3, eps)
    assert jnp.allclose(out3, ref3, atol=1e-4, rtol=1e-4), "mismatch vs reference (packed partial)"

    # 4) Fallback (rows not divisible by k) -> standard lane-sparse path.
    x4 = jax.random.normal(jax.random.PRNGKey(7), (3, 5, 32), dtype=jnp.float32)      # rows=15
    out4 = jax.block_until_ready(layer_norm(x4, a_2, b_2, eps=eps))
    ref4 = _layer_norm_ref(x4, a_2, b_2, eps)
    assert jnp.allclose(out4, ref4, atol=1e-4, rtol=1e-4), "mismatch vs reference (fallback)"

    print("KERNEL_OK")
</pallas_src>

<mosaic_0001>
module attributes {stable_mosaic.version = 11 : i64} {
  func.func @_layernorm_packed_kernel(%arg0: i32, %arg1: memref<4x128xf32, #tpu.memory_space<vmem>>, %arg2: memref<1x128xf32, #tpu.memory_space<vmem>>, %arg3: memref<1x128xf32, #tpu.memory_space<vmem>>, %arg4: memref<128x4xf32, #tpu.memory_space<vmem>>, %arg5: memref<4x128xf32, #tpu.memory_space<vmem>>, %arg6: memref<4x128xf32, #tpu.memory_space<vmem>>) attributes {dimension_semantics = [#tpu.dimension_semantics<parallel>], iteration_bounds = array<i64: 1>, scalar_prefetch = 0 : i64, scratch_operands = 0 : i64, tpu.core_type = #tpu.core_type<tc>, window_params = [{transform_indices = @transform_0, window_bounds = array<i64: 4, 128>}, {pipeline_mode = #tpu.pipeline_mode<synchronous>, transform_indices = @transform_1, window_bounds = array<i64: 1, 128>}, {pipeline_mode = #tpu.pipeline_mode<synchronous>, transform_indices = @transform_2, window_bounds = array<i64: 1, 128>}, {pipeline_mode = #tpu.pipeline_mode<synchronous>, transform_indices = @transform_3, window_bounds = array<i64: 128, 4>}, {pipeline_mode = #tpu.pipeline_mode<synchronous>, transform_indices = @transform_4, window_bounds = array<i64: 4, 128>}, {transform_indices = @transform_5, window_bounds = array<i64: 4, 128>}]} {
    %c0 = arith.constant 0 : index
    %c0_0 = arith.constant 0 : index
    %0 = vector.load %arg1[%c0, %c0_0] : memref<4x128xf32, #tpu.memory_space<vmem>>, vector<4x128xf32>
    %c0_1 = arith.constant 0 : index
    %c0_2 = arith.constant 0 : index
    %1 = vector.load %arg2[%c0_1, %c0_2] : memref<1x128xf32, #tpu.memory_space<vmem>>, vector<1x128xf32>
    %c0_3 = arith.constant 0 : index
    %c0_4 = arith.constant 0 : index
    %2 = vector.load %arg3[%c0_3, %c0_4] : memref<1x128xf32, #tpu.memory_space<vmem>>, vector<1x128xf32>
    %c0_5 = arith.constant 0 : index
    %c0_6 = arith.constant 0 : index
    %3 = vector.load %arg4[%c0_5, %c0_6] : memref<128x4xf32, #tpu.memory_space<vmem>>, vector<128x4xf32>
    %c0_7 = arith.constant 0 : index
    %c0_8 = arith.constant 0 : index
    %4 = vector.load %arg5[%c0_7, %c0_8] : memref<4x128xf32, #tpu.memory_space<vmem>>, vector<4x128xf32>
    %cst = arith.constant dense<0.000000e+00> : vector<4x4xf32>
    %5 = tpu.matmul %0, %3, %cst {dimension_numbers = #tpu.dot_dimension_numbers<[1], [0], [0], [1], [0, 0, 1, 1], [], []>} : vector<4x128xf32>, vector<128x4xf32>, vector<4x4xf32> -> vector<4x4xf32>
    %cst_9 = arith.constant 3.125000e-02 : f32
    %6 = vector.broadcast %cst_9 : f32 to vector<4x4xf32>
    %7 = arith.mulf %5, %6 : vector<4x4xf32>
    %cst_10 = arith.constant dense<0.000000e+00> : vector<4x128xf32>
    %8 = tpu.matmul %7, %4, %cst_10 {dimension_numbers = #tpu.dot_dimension_numbers<[1], [0], [0], [1], [0, 0, 1, 1], [], []>} : vector<4x4xf32>, vector<4x128xf32>, vector<4x128xf32> -> vector<4x128xf32>
    %9 = arith.subf %0, %8 : vector<4x128xf32>
    %10 = arith.mulf %9, %9 : vector<4x128xf32>
    %cst_11 = arith.constant dense<0.000000e+00> : vector<4x4xf32>
    %11 = tpu.matmul %10, %3, %cst_11 {dimension_numbers = #tpu.dot_dimension_numbers<[1], [0], [0], [1], [0, 0, 1, 1], [], []>} : vector<4x128xf32>, vector<128x4xf32>, vector<4x4xf32> -> vector<4x4xf32>
    %cst_12 = arith.constant 0.0322580636 : f32
    %12 = vector.broadcast %cst_12 : f32 to vector<4x4xf32>
    %13 = arith.mulf %11, %12 : vector<4x4xf32>
    %14 = math.sqrt %13 : vector<4x4xf32>
    %cst_13 = arith.constant 9.99999997E-7 : f32
    %15 = vector.broadcast %cst_13 : f32 to vector<4x4xf32>
    %16 = arith.addf %14, %15 : vector<4x4xf32>
    %17 = tpu.reciprocal %16 {approx = true} : vector<4x4xf32> -> vector<4x4xf32>
    %18 = arith.mulf %16, %17 : vector<4x4xf32>
    %cst_14 = arith.constant 2.000000e+00 : f32
    %19 = vector.broadcast %cst_14 : f32 to vector<4x4xf32>
    %20 = arith.subf %19, %18 : vector<4x4xf32>
    %21 = arith.mulf %17, %20 : vector<4x4xf32>
    %cst_15 = arith.constant dense<0.000000e+00> : vector<4x128xf32>
    %22 = tpu.matmul %21, %4, %cst_15 {dimension_numbers = #tpu.dot_dimension_numbers<[1], [0], [0], [1], [0, 0, 1, 1], [], []>} : vector<4x4xf32>, vector<4x128xf32>, vector<4x128xf32> -> vector<4x128xf32>
    %23 = arith.mulf %9, %22 : vector<4x128xf32>
    %24 = vector.broadcast %1 : vector<1x128xf32> to vector<4x128xf32>
    %25 = arith.mulf %23, %24 : vector<4x128xf32>
    %26 = vector.broadcast %2 : vector<1x128xf32> to vector<4x128xf32>
    %27 = arith.addf %25, %26 : vector<4x128xf32>
    %c0_16 = arith.constant 0 : index
    %c0_17 = arith.constant 0 : index
    %28 = vector.load %arg6[%c0_16, %c0_17] : memref<4x128xf32, #tpu.memory_space<vmem>>, vector<4x128xf32>
    tpu.vector_store %arg6[%c0_16, %c0_17], %27 {strides = array<i32>} : memref<4x128xf32, #tpu.memory_space<vmem>>, vector<4x128xf32>,
    return
  }
  func.func @transform_0(%arg0: i32) -> (i32, i32) {
    %c0_i32 = arith.constant 0 : i32
    %c0_i32_0 = arith.constant 0 : i32
    return %arg0, %c0_i32 : i32, i32
  }
  func.func @transform_1(%arg0: i32) -> (i32, i32) {
    %c0_i32 = arith.constant 0 : i32
    %c0_i32_0 = arith.constant 0 : i32
    %c0_i32_1 = arith.constant 0 : i32
    return %c0_i32, %c0_i32_0 : i32, i32
  }
  func.func @transform_2(%arg0: i32) -> (i32, i32) {
    %c0_i32 = arith.constant 0 : i32
    %c0_i32_0 = arith.constant 0 : i32
    %c0_i32_1 = arith.constant 0 : i32
    return %c0_i32, %c0_i32_0 : i32, i32
  }
  func.func @transform_3(%arg0: i32) -> (i32, i32) {
    %c0_i32 = arith.constant 0 : i32
    %c0_i32_0 = arith.constant 0 : i32
    %c0_i32_1 = arith.constant 0 : i32
    return %c0_i32, %c0_i32_0 : i32, i32
  }
  func.func @transform_4(%arg0: i32) -> (i32, i32) {
    %c0_i32 = arith.constant 0 : i32
    %c0_i32_0 = arith.constant 0 : i32
    %c0_i32_1 = arith.constant 0 : i32
    return %c0_i32, %c0_i32_0 : i32, i32
  }
  func.func @transform_5(%arg0: i32) -> (i32, i32) {
    %c0_i32 = arith.constant 0 : i32
    %c0_i32_0 = arith.constant 0 : i32
    return %arg0, %c0_i32 : i32, i32
  }
}

</mosaic_0001>

<bundles_post_ra>
// kernel: tpu_custom_call.1
= control target key start
LH: loop header
LB: loop body
LE: loop exit
PB: predicated region body
PF: predicated region fallthrough
CT: control target
= control target key end

     0   :  { %v582_v3 = vmov 0.0|0.0   ;;  %vm583_vm0 = vmmov 0   ;;  %v584_v6 = vmov 0.0   ;;  %s710_s0 = inlined_call_operand.vmem [shape: f32[4,128], index: 0, kind: input, shape index: {}]   ;;  %s711_s1 = inlined_call_operand.vmem [shape: f32[1,128], index: 1, kind: input, shape index: {}]   ;;  %s712_s2 = inlined_call_operand.vmem [shape: f32[1,128], index: 2, kind: input, shape index: {}]   ;;  %s713_s3 = inlined_call_operand.vmem [shape: f32[128,4], index: 3, kind: input, shape index: {}]   ;;  %s714_s4 = inlined_call_operand.vmem [shape: f32[4,128], index: 4, kind: input, shape index: {}]   ;;  %s715_s5 = inlined_call_operand.hbm [shape: f32[4,128], index: 5, kind: output, shape index: {}]  }
   0x1   :  { %v24_v0 = vld [vmem:[%s713_s3] sm:$0xff]  ;;  %v25_v1 = vld [vmem:[%s713_s3 + $0x8] sm:$0xff]  ;;  %v26_v2 = vld [vmem:[%s713_s3 + $0x10] sm:$0xff]  ;;  %502 = vmatprep.subr.bf16.mxu0 %v582_v3  ;;  %454 = vmatprep.mubr.msk.f32.mxu0 %vm583_vm0, %v584_v6 }
   0x2   :  { %v503_v4 = vpack.c.bf16 %v25_v1, %v24_v0  ;;  %v27_v5 = vld [vmem:[%s713_s3 + $0x18] sm:$0xff]  ;;  %457 = vmatprep.subr.mxu1 %v584_v6  ;;  %459 = vmatprep.mubr.msk.f32.mxu1 %vm583_vm0, %v584_v6  ;;  %v28_v8 = vld [vmem:[%s713_s3 + $0x20] sm:$0xff]  ;;  %v29_v9 = vld [vmem:[%s713_s3 + $0x28] sm:$0xff] }
   0x3   :  { %v506_v7 = vpack.c.bf16 %v27_v5, %v26_v2 }
   0x4   :  { %504 = vmatpush3.bf16.msra.mxu0 %v503_v4 }
   0x5   :  { %505 = vmatprep.subr.bf16.mxu0 %v582_v3 }
   0x6   :  { %10 = vsyncpa [#allocation3], 0  ;;  %v509_v10 = vpack.c.bf16 %v29_v9, %v28_v8  ;;  %v30_v11 = vld [vmem:[%s713_s3 + $0x30] sm:$0xff]  ;;  %v31_v12 = vld [vmem:[%s713_s3 + $0x38] sm:$0xff]  ;;  %vm116_vm1 = vcmask 1043456   ;;  %vm112_vm2 = vcmask 31744  }
   0x7   :  { %v512_v13 = vpack.c.bf16 %v31_v12, %v30_v11  ;;  %v32_v14 = vld [vmem:[%s713_s3 + $0x40] sm:$0xff]  ;;  %v33_v15 = vld [vmem:[%s713_s3 + $0x48] sm:$0xff]  ;;  %v34_v17 = vld [vmem:[%s713_s3 + $0x50] sm:$0xff]  ;;  %s585_s30 = smov [#allocation2]  }
   0x8   :  { %507 = vmatpush3.bf16.msra.mxu0 %v506_v7  ;;  %v515_v16 = vpack.c.bf16 %v33_v15, %v32_v14  ;;  %v35_v18 = vld [vmem:[%s713_s3 + $0x58] sm:$0xff]  ;;  %v36_v20 = vld [vmem:[%s713_s3 + $0x60] sm:$0xff]  ;;  %v37_v21 = vld [vmem:[%s713_s3 + $0x68] sm:$0xff]  ;;  %s370_s6 = sshll.u32 %s585_s30, 4  ;;  %s371_s6 = int_to_ptr.vmem [resolvable:$true] %s370_s6 }
   0x9   :  { %508 = vmatprep.subr.bf16.mxu0 %v582_v3  ;;  %v518_v19 = vpack.c.bf16 %v35_v18, %v34_v17  ;;  %v521_v22 = vpack.c.bf16 %v37_v21, %v36_v20  ;;  %v38_v23 = vld [vmem:[%s713_s3 + $0x70] sm:$0xff]  ;;  %v39_v24 = vld [vmem:[%s713_s3 + $0x78] sm:$0xff]  ;;  %v21_v26 = vld [vmem:[%s710_s0] sm:$0xf]  ;;  %s558_s7 = scalar_lea.vmem %s371_s6, 64  ;;  %p563_p1 = scmp.lt.s32.totalorder %s371_s6, %s371_s6 }
   0xa   :  { %v524_v25 = vpack.c.bf16 %v39_v24, %v38_v23  ;;  %v40_v27 = vld [vmem:[%s714_s4] sm:$0xf]  ;;  %p559_p0 = scmp.ne.s32.totalorder %s371_s6, %s558_s7  ;;  %p564_p2 = scmp.lt.s32.totalorder %s558_s7, %s558_s7 }
   0xb   :  { %458 = vmatpush3.msk.msra.mxu1 %vm116_vm1, %v40_v27  ;;  %v382_v48 = vld [vmem:[%s711_s1] ss:$0 sm:$0xff] }
   0xc   :  { %510 = vmatpush3.bf16.msra.mxu0 %v509_v10  ;;  %526 = vmatprep.subr.bf16.mxu1 %v582_v3  ;;  %v383_v52 = vld [vmem:[%s712_s2] ss:$0 sm:$0xff]  ;;  %p565_p3 = por %p564_p2, %p563_p1 }
   0xd   :  { %511 = vmatprep.subr.bf16.mxu0 %v582_v3 }
   0xe   :  { %p566_p4 = pnand %p565_p3, %p559_p0 }
  0x10   :  { %513 = vmatpush3.bf16.msra.mxu0 %v512_v13 }
  0x11   :  { %514 = vmatprep.subr.bf16.mxu0 %v582_v3 }
  0x14   :  { %516 = vmatpush3.bf16.msra.mxu0 %v515_v16 }
  0x15   :  { %517 = vmatprep.subr.bf16.mxu0 %v582_v3 }
  0x18   :  { %519 = vmatpush3.bf16.msra.mxu0 %v518_v19 }
  0x19   :  { %520 = vmatprep.subr.bf16.mxu0 %v582_v3 }
  0x1c   :  { %522 = vmatpush3.bf16.msra.mxu0 %v521_v22 }
  0x1d   :  { %523 = vmatprep.subr.bf16.mxu0 %v582_v3 }
  0x20   :  { %525 = vmatpush3.bf16.msra.mxu0 %v524_v25 }
  0x21   :  { %497 = vmatprep.subr.mxu0 %v584_v6 }
  0x23   :  { %455 = vmatmul.mubr.f32.vlgmr.msra.gmra.mrb[0].mxu0 %v21_v26 }
  0x24   :  { %499 = vmatprep.mubr.msk.f32.mxu0 %vm583_vm0, %v584_v6  ;;  %498 = vmatpush3.msk.msra.mxu0 %vm116_vm1, %v40_v27 }
  0xf6   :  { %v107_v28 = vpop.f32.mrb[0].mxu0 }
  0xf7   :  { %v111_v29 = vmul.f32 0.03125, %v107_v28  ;;  %v456_v30 = vpop.f32.mrb[1].mxu0 }
  0xf9   :  { %460 = vmatmul.mubr.msk.f32.vlgmr.msra.gmra.mrb[0].mxu1 %vm112_vm2, %v111_v29 }
  0xfa   :  { %528 = vmatpush3.bf16.msra.mxu1 %v503_v4  ;;  %494 = vmatprep.mubr.msk.f32.mxu1 %vm583_vm0, %v584_v6 }
  0xfb   :  { %529 = vmatprep.subr.bf16.mxu1 %v582_v3 }
  0xfe   :  { %531 = vmatpush3.bf16.msra.mxu1 %v506_v7 }
  0xff   :  { %532 = vmatprep.subr.bf16.mxu1 %v582_v3 }
 0x102   :  { %534 = vmatpush3.bf16.msra.mxu1 %v509_v10 }
 0x103   :  { %535 = vmatprep.subr.bf16.mxu1 %v582_v3 }
 0x106   :  { %537 = vmatpush3.bf16.msra.mxu1 %v512_v13 }
 0x107   :  { %538 = vmatprep.subr.bf16.mxu1 %v582_v3 }
 0x10a   :  { %540 = vmatpush3.bf16.msra.mxu1 %v515_v16 }
 0x10b   :  { %541 = vmatprep.subr.bf16.mxu1 %v582_v3 }
 0x10e   :  { %543 = vmatpush3.bf16.msra.mxu1 %v518_v19 }
 0x10f   :  { %544 = vmatprep.subr.bf16.mxu1 %v582_v3 }
 0x112   :  { %546 = vmatpush3.bf16.msra.mxu1 %v521_v22 }
 0x113   :  { %547 = vmatprep.subr.bf16.mxu1 %v582_v3 }
 0x116   :  { %549 = vmatpush3.bf16.msra.mxu1 %v524_v25 }
 0x1cc   :  { %v186_v31 = vpop.f32.mrb[0].mxu1 }
 0x1cd   :  { %v190_v32 = vsub.f32 %v21_v26, %v186_v31  ;;  %v461_v33 = vpop.f32.mrb[1].mxu1 }
 0x1cf   :  { %v191_v34 = vmul.f32 %v190_v32, %v190_v32 }
 0x1d1   :  { %495 = vmatmul.mubr.f32.vlgmr.msra.gmra.mrb[2].mxu1 %v191_v34 }
 0x2a4   :  { %v258_v35 = vpop.f32.mrb[2].mxu1 }
 0x2a5   :  { %v262_v36 = vmul.f32 0.032258064, %v258_v35  ;;  %v496_v37 = vpop.f32.mrb[3].mxu1 }
 0x2a7   :  { %554 = vrsqrt.f32 %v262_v36  ;;  %vm265_vm3 = vcmp.eq.f32.partialorder %v262_v36, inf  ;;  %v268_v40 = vand.u32 2147483648, %v262_v36  ;;  %vm267_vm4 = vcmp.eq.f32.partialorder %v262_v36, 0.0 }
 0x2b1   :  { %v555_v38 = vpop.eup %554 }
 0x2b2   :  { %v264_v39 = vmul.f32 %v555_v38, %v262_v36 }
 0x2b4   :  { %v266_v41 = vsel %vm265_vm3, %v262_v36, %v264_v39 }
 0x2b5   :  { %v269_v42 = vsel %vm267_vm4, %v268_v40, %v266_v41 }
 0x2b6   :  { %v270_v43 = vadd.f32 1e-06, %v269_v42 }
 0x2b8   :  { %556 = vrcp.f32 %v270_v43 }
 0x2c2   :  { %v557_v44 = vpop.eup %556 }
 0x2c3   :  { %v272_v45 = vmul.f32 %v557_v44, %v270_v43 }
 0x2c5   :  { %v273_v46 = vsub.f32 2.0, %v272_v45 }
 0x2c7   :  { %v274_v47 = vmul.f32 %v557_v44, %v273_v46 }
 0x2c9   :  { %500 = vmatmul.mubr.msk.f32.vlgmr.msra.gmra.mrb[2].mxu0 %vm112_vm2, %v274_v47 }
 0x39c   :  { %v344_v49 = vpop.f32.mrb[2].mxu0 }
 0x39d   :  { %v348_v50 = vmul.f32 %v344_v49, %v190_v32  ;;  %v501_v51 = vpop.f32.mrb[3].mxu0 }
 0x39f   :  { %v355_v53 = vmul.f32 %v382_v48, %v348_v50 }
 0x3a1   :  { %v362_v54 = vadd.f32 %v383_v52, %v355_v53 }
 0x3a3   :  { %363 = vst [vmem:[#allocation2] sm:$0xf] %v362_v54 }
 0x3a4   :  { %569 = shalt.err (!%p566_p4)
}
 0x3a5   :  { %s570_s9 = scalar_lea.hbm %s715_s5, 64 }
 0x3a6   :  { %p571_p5 = scmp.ne.s32.totalorder %s715_s5, %s570_s9  ;;  %p574_p6 = scmp.lt.u32.totalorder %s570_s9, %s715_s5 }
 0x3a8   :  { %p576_p7 = pnand %p574_p6, %p571_p5 }
 0x3aa   :  { %579 = shalt.err (!%p576_p7)
}
 0x3ab   :  { %373 = dma.vmem_to_hbm [thread:$0]  %s371_s6, 64, %s715_s5, [#allocation3]  }
 0x3ac   :  { %580 = dma.done.wait [#allocation3], 64  }
 0x3ad   :  { %581 = vsyncadd [#allocation3], 4294967232 }
 0x3ae   :  { %377 = vsyncpa [#allocation3], 1 }

</bundles_post_ra>
